<compile_context>
chip_gen: v7x
topology: tpu7x:2x2x1
jax: 0.10.0
libtpu: 0.0.40
codegen_flags: <defaults>
</compile_context>

<pallas_src>
import jax
import jax.numpy as jnp
from jax.experimental import pallas as pl
from jax.experimental.pallas import tpu as pltpu

HIDDEN = 128


def _round_up(n, m):
    return ((n + m - 1) // m) * m


# --------------------------------------------------------------------------
# Kernel: trunk (2x Linear+ReLU) + folded dueling head, one batch tile.
# --------------------------------------------------------------------------
def dueling_kernel(x_ref, w1_ref, b1_ref, w2_ref, b2_ref, wq_ref, bq_ref, q_ref):
    # ---- MLP trunk: Linear(obs,128) -> ReLU -> Linear(128,128) -> ReLU ----
    x = x_ref[...].astype(jnp.bfloat16)                               # in-kernel cast
    h1 = jnp.dot(x, w1_ref[...], preferred_element_type=jnp.float32)
    h1 = jnp.maximum(h1 + b1_ref[...], 0.0).astype(jnp.bfloat16)      # (tb, 128)
    h2 = jnp.dot(h1, w2_ref[...], preferred_element_type=jnp.float32)
    h2 = jnp.maximum(h2 + b2_ref[...], 0.0)                           # (tb, 128) f32

    # ---- Folded dueling head (f32): q = h2 @ W_q + b_q ----
    q = jnp.dot(h2, wq_ref[...], preferred_element_type=jnp.float32)  # (tb, ac)
    q_ref[...] = (q + bq_ref[...]).astype(q_ref.dtype)


# --------------------------------------------------------------------------
# Parameter preparation: fold value head + dueling mean into one projection.
# Trunk weights -> bf16 (MXU operands); head projection stays f32.
# --------------------------------------------------------------------------
def prepare_kernel_params(params):
    w1, b1, w2, b2, wv, bv, wa, ba = params
    ac = wa.shape[1]

    # q = h @ (wv + wa - mean_col(wa)) + (bv + ba - mean(ba))   -- exact fold
    wq = wv + wa - wa.mean(axis=1, keepdims=True)                 # (128, ac)
    bq = (bv + ba - ba.mean()).reshape(1, ac)                     # (1, ac)

    kparams = (
        w1.astype(jnp.bfloat16),
        b1.astype(jnp.float32).reshape(1, HIDDEN),
        w2.astype(jnp.bfloat16),
        b2.astype(jnp.float32).reshape(1, HIDDEN),
        wq.astype(jnp.float32),                                   # keep f32
        bq.astype(jnp.float32),
    )
    return kparams


# --------------------------------------------------------------------------
# Wrapper: batch-tiled pallas_call with weights pinned via constant index_maps.
# --------------------------------------------------------------------------
def dueling_forward(x, kparams, *, tile_b=1024):
    w1, b1, w2, b2, wq, bq = kparams
    B, obs = x.shape
    ac = wq.shape[1]

    # Tile selection: minimal per-tile padding (<8 rows), big tiles to amortize
    # per-step overhead, and >=2 tiles when possible so v7x's two TensorCores
    # both get work under dimension_semantics=("parallel",).
    num_tiles = pl.cdiv(B, tile_b)
    if B >= 16:
        num_tiles = max(num_tiles, 2)
    tb = _round_up(pl.cdiv(B, num_tiles), 8)
    b_pad = num_tiles * tb

    xp = x if b_pad == B else jnp.pad(x, ((0, b_pad - B), (0, 0)))

    q = pl.pallas_call(
        dueling_kernel,
        out_shape=jax.ShapeDtypeStruct((b_pad, ac), jnp.float32),
        grid=(num_tiles,),
        in_specs=[
            pl.BlockSpec((tb, obs), lambda i: (i, 0)),           # x: tiled over batch
            pl.BlockSpec((obs, HIDDEN), lambda i: (0, 0)),       # w1: VMEM-resident
            pl.BlockSpec((1, HIDDEN), lambda i: (0, 0)),         # b1
            pl.BlockSpec((HIDDEN, HIDDEN), lambda i: (0, 0)),    # w2
            pl.BlockSpec((1, HIDDEN), lambda i: (0, 0)),         # b2
            pl.BlockSpec((HIDDEN, ac), lambda i: (0, 0)),        # folded head W_q (f32)
            pl.BlockSpec((1, ac), lambda i: (0, 0)),             # folded head b_q (f32)
        ],
        out_specs=pl.BlockSpec((tb, ac), lambda i: (i, 0)),      # unpadded ac lanes
        compiler_params=pltpu.CompilerParams(
            dimension_semantics=("parallel",)),                  # v7x: 2 TCs
    )(xp, w1, b1, w2, b2, wq, bq)

    return q if b_pad == B else q[:B]


# --------------------------------------------------------------------------
# Init (PyTorch nn.Linear style) + pure-JAX reference (mirrors the module).
# --------------------------------------------------------------------------
def init_params(key, obs, ac):
    """U(-1/sqrt(fan_in), 1/sqrt(fan_in)); weights stored as (in, out)."""
    ks = jax.random.split(key, 8)

    def lin(kw, kb, fan_in, fan_out):
        bound = 1.0 / jnp.sqrt(jnp.float32(fan_in))
        w = jax.random.uniform(kw, (fan_in, fan_out), jnp.float32, -bound, bound)
        b = jax.random.uniform(kb, (1, fan_out), jnp.float32, -bound, bound)
        return w, b

    w1, b1 = lin(ks[0], ks[1], obs, HIDDEN)
    w2, b2 = lin(ks[2], ks[3], HIDDEN, HIDDEN)
    wv, bv = lin(ks[4], ks[5], HIDDEN, 1)
    wa, ba = lin(ks[6], ks[7], HIDDEN, ac)
    return (w1, b1, w2, b2, wv, bv, wa, ba)


def reference_forward(x, params):
    """Pure-JAX f32 reference mirroring the PyTorch forward."""
    w1, b1, w2, b2, wv, bv, wa, ba = params
    h = jnp.maximum(x @ w1 + b1, 0.0)
    h = jnp.maximum(h @ w2 + b2, 0.0)
    value = h @ wv + bv
    adv = h @ wa + ba
    return value + adv - adv.mean(axis=1, keepdims=True)


if __name__ == "__main__":
    key = jax.random.PRNGKey(0)
    k_param, k_x = jax.random.split(key)

    B, OBS, AC = 8, 32, 8
    params = init_params(k_param, OBS, AC)
    x = jax.random.normal(k_x, (B, OBS), jnp.float32)

    kparams = prepare_kernel_params(params)
    q = dueling_forward(x, kparams)
    q = jax.block_until_ready(q)

    q_ref = reference_forward(x, params)
    assert q.shape == (B, AC)
    # bf16 trunk MXU operands vs f32 reference -> loose-but-safe tolerance.
    assert jnp.allclose(q, q_ref, atol=5e-2, rtol=5e-2), "mismatch vs reference"

    print("KERNEL_OK")
</pallas_src>

<mosaic_0001>
module attributes {stable_mosaic.version = 11 : i64} {
  func.func @dueling_kernel(%arg0: i32, %arg1: memref<8x32xf32, #tpu.memory_space<vmem>>, %arg2: memref<32x128xbf16, #tpu.memory_space<vmem>>, %arg3: memref<1x128xf32, #tpu.memory_space<vmem>>, %arg4: memref<128x128xbf16, #tpu.memory_space<vmem>>, %arg5: memref<1x128xf32, #tpu.memory_space<vmem>>, %arg6: memref<128x8xf32, #tpu.memory_space<vmem>>, %arg7: memref<1x8xf32, #tpu.memory_space<vmem>>, %arg8: memref<8x8xf32, #tpu.memory_space<vmem>>) attributes {dimension_semantics = [#tpu.dimension_semantics<parallel>], iteration_bounds = array<i64: 1>, scalar_prefetch = 0 : i64, scratch_operands = 0 : i64, tpu.core_type = #tpu.core_type<tc>, window_params = [{transform_indices = @transform_0, window_bounds = array<i64: 8, 32>}, {pipeline_mode = #tpu.pipeline_mode<synchronous>, transform_indices = @transform_1, window_bounds = array<i64: 32, 128>}, {pipeline_mode = #tpu.pipeline_mode<synchronous>, transform_indices = @transform_2, window_bounds = array<i64: 1, 128>}, {pipeline_mode = #tpu.pipeline_mode<synchronous>, transform_indices = @transform_3, window_bounds = array<i64: 128, 128>}, {pipeline_mode = #tpu.pipeline_mode<synchronous>, transform_indices = @transform_4, window_bounds = array<i64: 1, 128>}, {pipeline_mode = #tpu.pipeline_mode<synchronous>, transform_indices = @transform_5, window_bounds = array<i64: 128, 8>}, {pipeline_mode = #tpu.pipeline_mode<synchronous>, transform_indices = @transform_6, window_bounds = array<i64: 1, 8>}, {transform_indices = @transform_7, window_bounds = array<i64: 8, 8>}]} {
    %c0 = arith.constant 0 : index
    %c0_0 = arith.constant 0 : index
    %0 = vector.load %arg1[%c0, %c0_0] : memref<8x32xf32, #tpu.memory_space<vmem>>, vector<8x32xf32>
    %1 = arith.truncf %0 : vector<8x32xf32> to vector<8x32xbf16>
    %c0_1 = arith.constant 0 : index
    %c0_2 = arith.constant 0 : index
    %2 = vector.load %arg2[%c0_1, %c0_2] : memref<32x128xbf16, #tpu.memory_space<vmem>>, vector<32x128xbf16>
    %cst = arith.constant dense<0.000000e+00> : vector<8x128xf32>
    %3 = tpu.matmul %1, %2, %cst {dimension_numbers = #tpu.dot_dimension_numbers<[1], [0], [0], [1], [0, 0, 1, 1], [], []>} : vector<8x32xbf16>, vector<32x128xbf16>, vector<8x128xf32> -> vector<8x128xf32>
    %c0_3 = arith.constant 0 : index
    %c0_4 = arith.constant 0 : index
    %4 = vector.load %arg3[%c0_3, %c0_4] : memref<1x128xf32, #tpu.memory_space<vmem>>, vector<1x128xf32>
    %5 = vector.broadcast %4 : vector<1x128xf32> to vector<8x128xf32>
    %6 = arith.addf %3, %5 : vector<8x128xf32>
    %cst_5 = arith.constant 0.000000e+00 : f32
    %7 = vector.broadcast %cst_5 : f32 to vector<8x128xf32>
    %8 = arith.maximumf %6, %7 : vector<8x128xf32>
    %9 = arith.truncf %8 : vector<8x128xf32> to vector<8x128xbf16>
    %c0_6 = arith.constant 0 : index
    %c0_7 = arith.constant 0 : index
    %10 = vector.load %arg4[%c0_6, %c0_7] : memref<128x128xbf16, #tpu.memory_space<vmem>>, vector<128x128xbf16>
    %cst_8 = arith.constant dense<0.000000e+00> : vector<8x128xf32>
    %11 = tpu.matmul %9, %10, %cst_8 {dimension_numbers = #tpu.dot_dimension_numbers<[1], [0], [0], [1], [0, 0, 1, 1], [], []>} : vector<8x128xbf16>, vector<128x128xbf16>, vector<8x128xf32> -> vector<8x128xf32>
    %c0_9 = arith.constant 0 : index
    %c0_10 = arith.constant 0 : index
    %12 = vector.load %arg5[%c0_9, %c0_10] : memref<1x128xf32, #tpu.memory_space<vmem>>, vector<1x128xf32>
    %13 = vector.broadcast %12 : vector<1x128xf32> to vector<8x128xf32>
    %14 = arith.addf %11, %13 : vector<8x128xf32>
    %cst_11 = arith.constant 0.000000e+00 : f32
    %15 = vector.broadcast %cst_11 : f32 to vector<8x128xf32>
    %16 = arith.maximumf %14, %15 : vector<8x128xf32>
    %c0_12 = arith.constant 0 : index
    %c0_13 = arith.constant 0 : index
    %17 = vector.load %arg6[%c0_12, %c0_13] : memref<128x8xf32, #tpu.memory_space<vmem>>, vector<128x8xf32>
    %cst_14 = arith.constant dense<0.000000e+00> : vector<8x8xf32>
    %18 = tpu.matmul %16, %17, %cst_14 {dimension_numbers = #tpu.dot_dimension_numbers<[1], [0], [0], [1], [0, 0, 1, 1], [], []>} : vector<8x128xf32>, vector<128x8xf32>, vector<8x8xf32> -> vector<8x8xf32>
    %c0_15 = arith.constant 0 : index
    %c0_16 = arith.constant 0 : index
    %19 = vector.load %arg7[%c0_15, %c0_16] : memref<1x8xf32, #tpu.memory_space<vmem>>, vector<1x8xf32>
    %20 = vector.broadcast %19 : vector<1x8xf32> to vector<8x8xf32>
    %21 = arith.addf %18, %20 : vector<8x8xf32>
    %c0_17 = arith.constant 0 : index
    %c0_18 = arith.constant 0 : index
    %22 = vector.load %arg8[%c0_17, %c0_18] : memref<8x8xf32, #tpu.memory_space<vmem>>, vector<8x8xf32>
    tpu.vector_store %arg8[%c0_17, %c0_18], %21 {strides = array<i32>} : memref<8x8xf32, #tpu.memory_space<vmem>>, vector<8x8xf32>,
    return
  }
  func.func @transform_0(%arg0: i32) -> (i32, i32) {
    %c0_i32 = arith.constant 0 : i32
    %c0_i32_0 = arith.constant 0 : i32
    return %arg0, %c0_i32 : i32, i32
  }
  func.func @transform_1(%arg0: i32) -> (i32, i32) {
    %c0_i32 = arith.constant 0 : i32
    %c0_i32_0 = arith.constant 0 : i32
    %c0_i32_1 = arith.constant 0 : i32
    return %c0_i32, %c0_i32_0 : i32, i32
  }
  func.func @transform_2(%arg0: i32) -> (i32, i32) {
    %c0_i32 = arith.constant 0 : i32
    %c0_i32_0 = arith.constant 0 : i32
    %c0_i32_1 = arith.constant 0 : i32
    return %c0_i32, %c0_i32_0 : i32, i32
  }
  func.func @transform_3(%arg0: i32) -> (i32, i32) {
    %c0_i32 = arith.constant 0 : i32
    %c0_i32_0 = arith.constant 0 : i32
    %c0_i32_1 = arith.constant 0 : i32
    return %c0_i32, %c0_i32_0 : i32, i32
  }
  func.func @transform_4(%arg0: i32) -> (i32, i32) {
    %c0_i32 = arith.constant 0 : i32
    %c0_i32_0 = arith.constant 0 : i32
    %c0_i32_1 = arith.constant 0 : i32
    return %c0_i32, %c0_i32_0 : i32, i32
  }
  func.func @transform_5(%arg0: i32) -> (i32, i32) {
    %c0_i32 = arith.constant 0 : i32
    %c0_i32_0 = arith.constant 0 : i32
    %c0_i32_1 = arith.constant 0 : i32
    return %c0_i32, %c0_i32_0 : i32, i32
  }
  func.func @transform_6(%arg0: i32) -> (i32, i32) {
    %c0_i32 = arith.constant 0 : i32
    %c0_i32_0 = arith.constant 0 : i32
    %c0_i32_1 = arith.constant 0 : i32
    return %c0_i32, %c0_i32_0 : i32, i32
  }
  func.func @transform_7(%arg0: i32) -> (i32, i32) {
    %c0_i32 = arith.constant 0 : i32
    %c0_i32_0 = arith.constant 0 : i32
    return %arg0, %c0_i32 : i32, i32
  }
}

</mosaic_0001>

<bundles_post_ra>
// kernel: tpu_custom_call.1
= control target key start
LH: loop header
LB: loop body
LE: loop exit
PB: predicated region body
PF: predicated region fallthrough
CT: control target
= control target key end

     0   :  { %v488_v1 = vmov 0.0   ;;  %vm489_vm0 = vmmov 0   ;;  %vm53_vm1 = vcmask 261120   ;;  %s637_s0 = inlined_call_operand.vmem [shape: f32[8,32], index: 0, kind: input, shape index: {}]   ;;  %s638_s1 = inlined_call_operand.vmem [shape: bf16[32,128], index: 1, kind: input, shape index: {}]   ;;  %s639_s2 = inlined_call_operand.vmem [shape: f32[1,128], index: 2, kind: input, shape index: {}]   ;;  %s640_s3 = inlined_call_operand.vmem [shape: bf16[128,128], index: 3, kind: input, shape index: {}]   ;;  %s641_s4 = inlined_call_operand.vmem [shape: f32[1,128], index: 4, kind: input, shape index: {}]   ;;  %s642_s5 = inlined_call_operand.vmem [shape: f32[128,8], index: 5, kind: input, shape index: {}]   ;;  %s643_s6 = inlined_call_operand.vmem [shape: f32[1,8], index: 6, kind: input, shape index: {}]   ;;  %s644_s7 = inlined_call_operand.hbm [shape: f32[8,8], index: 7, kind: output, shape index: {}]  }
   0x1   :  { %v454_v0 = vld [vmem:[%s638_s1] sm:$0xff]   ;;  %363 = vmatprep.subr.bf16.mxu0 %v488_v1  ;;  %v455_v2 = vld [vmem:[%s638_s1 + $0x8] sm:$0xff]   ;;  %371 = vmatprep.subr.bf16.mxu1 %v488_v1  ;;  %v458_v7 = vld [vmem:[%s640_s3 + $0x10] sm:$0xff]  }
   0x2   :  { %364 = vmatpush3.bf16.msra.mxu0 %v454_v0  ;;  %367 = vmatprep.mubr.msk.bf16.mxu0 %vm489_vm0, %v488_v1  ;;  %v28_v3 = vld [vmem:[%s637_s0] sm:$0xff]  ;;  %v457_v6 = vld [vmem:[%s640_s3 + $0x8] sm:$0xff]  }
   0x3   :  { %365 = vmatprep.subr.bf16.mxu0 %v488_v1  ;;  %v456_v4 = vld [vmem:[%s640_s3] sm:$0xff]   ;;  %387 = vmatprep.mubr.msk.bf16.mxu1 %vm489_vm0, %v488_v1  ;;  %v29_v5 = vpack.c.bf16 %v28_v3, %v28_v3 }
   0x4   :  { %372 = vmatpush3.bf16.msra.mxu1 %v456_v4 }
   0x5   :  { %373 = vmatprep.subr.bf16.mxu1 %v488_v1 }
   0x6   :  { %366 = vmatpush3.bf16.msra.mxu0 %v455_v2 }
   0x8   :  { %374 = vmatpush3.bf16.msra.mxu1 %v457_v6 }
   0x9   :  { %368 = vmatmul.mubr.msk.bf16.vlgmr.msra.gmra.mrb[0].mxu0 %vm53_vm1, %v29_v5  ;;  %375 = vmatprep.subr.bf16.mxu1 %v488_v1 }
   0xa   :  { %423 = vmatprep.mubr.msk.f32.mxu0 %vm489_vm0, %v488_v1 }
   0xb   :  { %12 = vsyncpa [#allocation3], 0  ;;  %v459_v8 = vld [vmem:[%s640_s3 + $0x18] sm:$0xff]   ;;  %v460_v9 = vld [vmem:[%s640_s3 + $0x20] sm:$0xff]   ;;  %v490_v16 = vmov 0.0|0.0   ;;  %s491_s8 = smov [#allocation2]  }
   0xc   :  { %376 = vmatpush3.bf16.msra.mxu1 %v458_v7  ;;  %v461_v10 = vld [vmem:[%s640_s3 + $0x28] sm:$0xff]   ;;  %v462_v11 = vld [vmem:[%s640_s3 + $0x30] sm:$0xff]   ;;  %v463_v12 = vld [vmem:[%s640_s3 + $0x38] sm:$0xff]   ;;  %426 = vmatprep.subr.bf16.mxu0 %v490_v16  ;;  %s312_s9 = sshll.u32 %s491_s8, 4  ;;  %vm304_vm2 = vcmask 64512   ;;  %s313_s9 = int_to_ptr.vmem [resolvable:$true] %s312_s9 }
   0xd   :  { %377 = vmatprep.subr.bf16.mxu1 %v488_v1  ;;  %v211_v13 = vld [vmem:[%s642_s5] sm:$0xff]  ;;  %v212_v14 = vld [vmem:[%s642_s5 + $0x8] sm:$0xff]  ;;  %v213_v15 = vld [vmem:[%s642_s5 + $0x10] sm:$0xff]  ;;  %p469_p1 = scmp.lt.s32.totalorder %s313_s9, %s313_s9 }
   0xe   :  { %v427_v17 = vpack.c.bf16 %v212_v14, %v211_v13  ;;  %v214_v18 = vld [vmem:[%s642_s5 + $0x18] sm:$0xff]  ;;  %v215_v20 = vld [vmem:[%s642_s5 + $0x20] sm:$0xff]  ;;  %v216_v21 = vld [vmem:[%s642_s5 + $0x28] sm:$0xff] }
   0xf   :  { %v430_v19 = vpack.c.bf16 %v214_v18, %v213_v15  ;;  %v433_v22 = vpack.c.bf16 %v216_v21, %v215_v20  ;;  %v217_v23 = vld [vmem:[%s642_s5 + $0x30] sm:$0xff]  ;;  %v218_v24 = vld [vmem:[%s642_s5 + $0x38] sm:$0xff]  ;;  %v219_v26 = vld [vmem:[%s642_s5 + $0x40] sm:$0xff] }
  0x10   :  { %378 = vmatpush3.bf16.msra.mxu1 %v459_v8  ;;  %428 = vmatpush3.bf16.msra.mxu0 %v427_v17  ;;  %v436_v25 = vpack.c.bf16 %v218_v24, %v217_v23  ;;  %v220_v27 = vld [vmem:[%s642_s5 + $0x48] sm:$0xff]  ;;  %v221_v29 = vld [vmem:[%s642_s5 + $0x50] sm:$0xff]  ;;  %v222_v30 = vld [vmem:[%s642_s5 + $0x58] sm:$0xff] }
  0x11   :  { %379 = vmatprep.subr.bf16.mxu1 %v488_v1  ;;  %429 = vmatprep.subr.bf16.mxu0 %v490_v16  ;;  %v439_v28 = vpack.c.bf16 %v220_v27, %v219_v26  ;;  %v442_v31 = vpack.c.bf16 %v222_v30, %v221_v29  ;;  %v223_v32 = vld [vmem:[%s642_s5 + $0x60] sm:$0xff]  ;;  %v224_v33 = vld [vmem:[%s642_s5 + $0x68] sm:$0xff]  ;;  %v225_v43 = vld [vmem:[%s642_s5 + $0x70] sm:$0xff] }
  0x12   :  { %v445_v34 = vpack.c.bf16 %v224_v33, %v223_v32  ;;  %v320_v35 = vld [vmem:[%s639_s2] ss:$0 sm:$0xff]  ;;  %v226_v44 = vld [vmem:[%s642_s5 + $0x78] sm:$0xff] }
  0x13   :  { %v448_v45 = vpack.c.bf16 %v226_v44, %v225_v43  ;;  %v324_v46 = vld [vmem:[%s641_s4] ss:$0 sm:$0xff]  ;;  %s464_s4 = scalar_lea.vmem %s313_s9, 128 }
  0x14   :  { %380 = vmatpush3.bf16.msra.mxu1 %v460_v9  ;;  %431 = vmatpush3.bf16.msra.mxu0 %v430_v19  ;;  %v333_v53 = vld [vmem:[%s643_s6] ss:$0 sm:$0xff]  ;;  %p465_p0 = scmp.ne.s32.totalorder %s313_s9, %s464_s4  ;;  %p470_p2 = scmp.lt.s32.totalorder %s464_s4, %s464_s4 }
  0x15   :  { %381 = vmatprep.subr.bf16.mxu1 %v488_v1  ;;  %432 = vmatprep.subr.bf16.mxu0 %v490_v16 }
  0x16   :  { %p471_p3 = por %p470_p2, %p469_p1 }
  0x18   :  { %382 = vmatpush3.bf16.msra.mxu1 %v461_v10  ;;  %434 = vmatpush3.bf16.msra.mxu0 %v433_v22  ;;  %p472_p4 = pnand %p471_p3, %p465_p0 }
  0x19   :  { %383 = vmatprep.subr.bf16.mxu1 %v488_v1  ;;  %435 = vmatprep.subr.bf16.mxu0 %v490_v16 }
  0x1c   :  { %384 = vmatpush3.bf16.msra.mxu1 %v462_v11  ;;  %437 = vmatpush3.bf16.msra.mxu0 %v436_v25 }
  0x1d   :  { %385 = vmatprep.subr.bf16.mxu1 %v488_v1  ;;  %438 = vmatprep.subr.bf16.mxu0 %v490_v16 }
  0x20   :  { %386 = vmatpush3.bf16.msra.mxu1 %v463_v12  ;;  %440 = vmatpush3.bf16.msra.mxu0 %v439_v28 }
  0x21   :  { %441 = vmatprep.subr.bf16.mxu0 %v490_v16 }
  0x24   :  { %443 = vmatpush3.bf16.msra.mxu0 %v442_v31 }
  0x25   :  { %444 = vmatprep.subr.bf16.mxu0 %v490_v16 }
  0x28   :  { %446 = vmatpush3.bf16.msra.mxu0 %v445_v34 }
  0x29   :  { %447 = vmatprep.subr.bf16.mxu0 %v490_v16 }
  0x2c   :  { %449 = vmatpush3.bf16.msra.mxu0 %v448_v45 }
  0xdc   :  { %v91_v36 = vpop.f32.mrb[0].mxu0 }
  0xdd   :  { %v92_v37 = vadd.f32 %v320_v35, %v91_v36  ;;  %v369_v38 = vpop.f32.mrb[1].mxu0 }
  0xde   :  { %v94_v39 = vpop.f32.mrb[2].mxu0 }
  0xdf   :  { %v97_v40 = vmax.f32 %v92_v37, 0.0  ;;  %v370_v41 = vpop.f32.mrb[3].mxu0 }
  0xe1   :  { %v98_v42 = vpack.c.bf16 %v97_v40, %v97_v40 }
  0xe3   :  { %388 = vmatmul.mubr.bf16.vlgmr.msra.gmra.mrb[0].mxu1 %v98_v42 }
 0x1b6   :  { %v204_v47 = vpop.f32.mrb[0].mxu1 }
 0x1b7   :  { %v205_v48 = vadd.f32 %v324_v46, %v204_v47  ;;  %v389_v49 = vpop.f32.mrb[1].mxu1 }
 0x1b8   :  { %v207_v50 = vpop.f32.mrb[2].mxu1 }
 0x1b9   :  { %v210_v51 = vmax.f32 %v205_v48, 0.0  ;;  %v390_v52 = vpop.f32.mrb[3].mxu1 }
 0x1bb   :  { %424 = vmatmul.mubr.f32.vlgmr.msra.gmra.mrb[4].mxu0 %v210_v51 }
 0x28e   :  { %v300_v54 = vpop.f32.mrb[4].mxu0 }
 0x28f   :  { %v301_v55 = vadd.f32 %v333_v53, %v300_v54  ;;  %v425_v56 = vpop.f32.mrb[5].mxu0 }
 0x291   :  { %305 = vst.msk [vmem:[#allocation2] sm:$0xff] %vm304_vm2, %v301_v55 }
 0x292   :  { %475 = shalt.err (!%p472_p4)
}
 0x293   :  { %s476_s10 = scalar_lea.hbm %s644_s7, 128 }
 0x294   :  { %p477_p5 = scmp.ne.s32.totalorder %s644_s7, %s476_s10  ;;  %p480_p6 = scmp.lt.u32.totalorder %s476_s10, %s644_s7 }
 0x296   :  { %p482_p7 = pnand %p480_p6, %p477_p5 }
 0x298   :  { %485 = shalt.err (!%p482_p7)
}
 0x299   :  { %315 = dma.vmem_to_hbm [thread:$0]  %s313_s9, 128, %s644_s7, [#allocation3]  }
 0x29a   :  { %486 = dma.done.wait [#allocation3], 128  }
 0x29b   :  { %487 = vsyncadd [#allocation3], 4294967168 }
 0x29c   :  { %319 = vsyncpa [#allocation3], 1 }

</bundles_post_ra>
